<compile_context>
chip_gen: v7x
topology: tpu7x:2x2x1
jax: 0.10.0
libtpu: 0.0.40
codegen_flags: <defaults>
</compile_context>

<pallas_src>
import jax
import jax.numpy as jnp
from jax.experimental import pallas as pl
from jax.experimental.pallas import tpu as pltpu


def attention_kernel(enc_ref, wenc_ref, rowbias_ref, out_ref):
    # enc_ref:     (tb, S, H)  native activation dtype (f32 / bf16)
    # wenc_ref:    (1, H)      folded encoder weight (f32)
    # rowbias_ref: (tb, 1)     dec·w_dec + b_fold, constant per batch row (f32)
    # out_ref:     (tb, S)     softmax weights
    enc = enc_ref[...].astype(jnp.float32)          # upcast after load (v5e-safe)
    w = wenc_ref[...]                               # (1, H)

    # scores[b,s] = <enc[b,s,:], w_enc>  — VPU multiply + lane reduce; MXU idle.
    scores = jnp.sum(enc * w[None, :, :], axis=-1)  # (tb, S)
    scores = scores + rowbias_ref[...]              # broadcast (tb,1) -> (tb,S)

    # Numerically stable softmax over the full (unpadded) seq axis.
    m = jnp.max(scores, axis=-1, keepdims=True)
    e = jnp.exp(scores - m)
    denom = jnp.sum(e, axis=-1, keepdims=True)
    out_ref[...] = (e / denom).astype(out_ref.dtype)   # exact divide: rows sum to 1


def attention_pallas(encoder_output, decoder_hidden, W_e, b_e, W_a):
    """encoder_output: (B,S,H)  decoder_hidden: (B,H)
       W_e: (2H,H)  b_e: (H,)  W_a: (H,)  ->  (B,S) softmax weights."""
    B, S, H = encoder_output.shape
    f32 = jnp.float32
    out_dtype = encoder_output.dtype
    elt = encoder_output.dtype.itemsize

    # --- fold the two linears (exact: no nonlinearity between them) -------------
    wa = W_a.astype(f32)
    w_enc_fold = (W_e[H:, :].astype(f32) @ wa).reshape(1, H)   # (1, H)
    w_dec_fold = W_e[:H, :].astype(f32) @ wa                   # (H,)
    b_fold = b_e.astype(f32) @ wa                              # scalar
    # Tiny (B,H)·(H) matvec done wrapper-side -> single (B,1) kernel operand.
    row_bias = (decoder_hidden.astype(f32) @ w_dec_fold + b_fold).reshape(B, 1)

    # --- batch tiling: no input padding; ragged last tile handled by Pallas -----
    # Per-batch-row VMEM cost in one grid step:
    #   double-buffered enc block (native dtype) + f32 copy + product temp + out.
    bytes_per_row = 2 * S * H * elt + 2 * S * H * 4 + 8 * S + 16
    vmem_budget = 36 * 1024 * 1024          # conservative: fits v7x's 64 MiB VMEM
    if B <= 8:
        tb = B                              # single block; dims equal full extents
    else:
        tb_budget = max(8, (vmem_budget // bytes_per_row) // 8 * 8)
        tb_steps = max(8, ((((B + 3) // 4) + 7) // 8) * 8)   # aim for >=4 steps
        tb = min(tb_budget, tb_steps)
    grid = (pl.cdiv(B, tb),)

    flops = 2 * B * S * H + 6 * B * S
    transcendentals = B * S
    bytes_accessed = B * S * H * elt + B * S * elt + H * 4 + B * 4
    cost = pl.CostEstimate(flops=flops,
                           transcendentals=transcendentals,
                           bytes_accessed=bytes_accessed)

    out = pl.pallas_call(
        attention_kernel,
        out_shape=jax.ShapeDtypeStruct((B, S), out_dtype),
        grid=grid,
        in_specs=[
            pl.BlockSpec((tb, S, H), lambda i: (i, 0, 0)),   # enc tile (full S, H)
            pl.BlockSpec((1, H), lambda i: (0, 0)),          # folded encoder weight
            pl.BlockSpec((tb, 1), lambda i: (i, 0)),         # per-row dec·w + bias
        ],
        out_specs=pl.BlockSpec((tb, S), lambda i: (i, 0)),
        compiler_params=pltpu.CompilerParams(
            dimension_semantics=("parallel",),   # batch tiles -> 2 TCs on v7x
            vmem_limit_bytes=48 * 1024 * 1024,   # allow large tiles; v7x-safe
        ),
        cost_estimate=cost,
    )(encoder_output, w_enc_fold, row_bias)

    return out


def attention_ref(encoder_output, decoder_hidden, W_e, b_e, W_a):
    """Pure-JAX reference matching the PyTorch forward."""
    B, S, H = encoder_output.shape
    dec = jnp.broadcast_to(decoder_hidden[:, None, :], (B, S, H))
    cat = jnp.concatenate([dec, encoder_output], axis=-1)             # (B, S, 2H)
    energy = cat @ W_e + b_e                                          # (B, S, H)
    alphas = (energy @ W_a.reshape(H, 1))[..., 0]                     # (B, S)
    return jax.nn.softmax(alphas, axis=-1)


if __name__ == "__main__":
    B, S, H = 2, 8, 32  # batch, seq_len, input_dims

    key = jax.random.PRNGKey(0)
    k_enc, k_dec, k_we, k_be, k_wa = jax.random.split(key, 5)

    encoder_output = jax.random.normal(k_enc, (B, S, H), dtype=jnp.float32)
    decoder_hidden = jax.random.normal(k_dec, (B, H), dtype=jnp.float32)

    # PyTorch-style uniform(-1/sqrt(fan_in), 1/sqrt(fan_in)) init
    bound_e = 1.0 / (2 * H) ** 0.5
    bound_a = 1.0 / H ** 0.5
    W_e = jax.random.uniform(k_we, (2 * H, H), jnp.float32, -bound_e, bound_e)
    b_e = jax.random.uniform(k_be, (H,), jnp.float32, -bound_e, bound_e)
    W_a = jax.random.uniform(k_wa, (H,), jnp.float32, -bound_a, bound_a)

    out = attention_pallas(encoder_output, decoder_hidden, W_e, b_e, W_a)
    out = jax.block_until_ready(out)

    ref = attention_ref(encoder_output, decoder_hidden, W_e, b_e, W_a)
    assert out.shape == (B, S)
    assert jnp.allclose(out, ref, atol=1e-4, rtol=1e-4), "mismatch vs reference"
    assert jnp.allclose(jnp.sum(out, axis=-1), 1.0, atol=1e-3), \
        "softmax rows must sum to 1"

    print("KERNEL_OK")
</pallas_src>

<mosaic_0001>
module attributes {stable_mosaic.version = 11 : i64} {
  func.func @attention_kernel(%arg0: i32, %arg1: memref<2x8x32xf32, #tpu.memory_space<vmem>>, %arg2: memref<1x32xf32, #tpu.memory_space<vmem>>, %arg3: memref<2x1xf32, #tpu.memory_space<vmem>>, %arg4: memref<2x8xf32, #tpu.memory_space<vmem>>) attributes {dimension_semantics = [#tpu.dimension_semantics<parallel>], iteration_bounds = array<i64: 1>, scalar_prefetch = 0 : i64, scratch_operands = 0 : i64, tpu.core_type = #tpu.core_type<tc>, window_params = [{transform_indices = @transform_0, window_bounds = array<i64: 2, 8, 32>}, {pipeline_mode = #tpu.pipeline_mode<synchronous>, transform_indices = @transform_1, window_bounds = array<i64: 1, 32>}, {transform_indices = @transform_2, window_bounds = array<i64: 2, 1>}, {transform_indices = @transform_3, window_bounds = array<i64: 2, 8>}]} {
    %c0 = arith.constant 0 : index
    %c0_0 = arith.constant 0 : index
    %c0_1 = arith.constant 0 : index
    %0 = vector.load %arg1[%c0, %c0_0, %c0_1] : memref<2x8x32xf32, #tpu.memory_space<vmem>>, vector<2x8x32xf32>
    %c0_2 = arith.constant 0 : index
    %c0_3 = arith.constant 0 : index
    %1 = vector.load %arg2[%c0_2, %c0_3] : memref<1x32xf32, #tpu.memory_space<vmem>>, vector<1x32xf32>
    %2 = vector.shape_cast %1 : vector<1x32xf32> to vector<1x1x32xf32>
    %3 = vector.broadcast %2 : vector<1x1x32xf32> to vector<2x8x32xf32>
    %4 = arith.mulf %0, %3 : vector<2x8x32xf32>
    %cst = arith.constant dense<0.000000e+00> : vector<2x8xf32>
    %5 = vector.multi_reduction <add>, %4, %cst [2] : vector<2x8x32xf32> to vector<2x8xf32>
    %c0_4 = arith.constant 0 : index
    %c0_5 = arith.constant 0 : index
    %6 = vector.load %arg3[%c0_4, %c0_5] : memref<2x1xf32, #tpu.memory_space<vmem>>, vector<2x1xf32>
    %7 = vector.broadcast %6 : vector<2x1xf32> to vector<2x8xf32>
    %8 = arith.addf %5, %7 : vector<2x8xf32>
    %cst_6 = arith.constant dense<0xFF800000> : vector<2xf32>
    %9 = vector.multi_reduction <maximumf>, %8, %cst_6 [1] : vector<2x8xf32> to vector<2xf32>
    %10 = vector.shape_cast %9 : vector<2xf32> to vector<2x1xf32>
    %11 = vector.broadcast %10 : vector<2x1xf32> to vector<2x8xf32>
    %12 = arith.subf %8, %11 : vector<2x8xf32>
    %13 = math.exp %12 : vector<2x8xf32>
    %cst_7 = arith.constant dense<0.000000e+00> : vector<2xf32>
    %14 = vector.multi_reduction <add>, %13, %cst_7 [1] : vector<2x8xf32> to vector<2xf32>
    %15 = vector.shape_cast %14 : vector<2xf32> to vector<2x1xf32>
    %16 = vector.broadcast %15 : vector<2x1xf32> to vector<2x8xf32>
    %17 = arith.divf %13, %16 : vector<2x8xf32>
    %c0_8 = arith.constant 0 : index
    %c0_9 = arith.constant 0 : index
    %18 = vector.load %arg4[%c0_8, %c0_9] : memref<2x8xf32, #tpu.memory_space<vmem>>, vector<2x8xf32>
    tpu.vector_store %arg4[%c0_8, %c0_9], %17 {strides = array<i32>} : memref<2x8xf32, #tpu.memory_space<vmem>>, vector<2x8xf32>,
    return
  }
  func.func @transform_0(%arg0: i32) -> (i32, i32, i32) {
    %c0_i32 = arith.constant 0 : i32
    %c0_i32_0 = arith.constant 0 : i32
    %c0_i32_1 = arith.constant 0 : i32
    return %arg0, %c0_i32, %c0_i32_0 : i32, i32, i32
  }
  func.func @transform_1(%arg0: i32) -> (i32, i32) {
    %c0_i32 = arith.constant 0 : i32
    %c0_i32_0 = arith.constant 0 : i32
    %c0_i32_1 = arith.constant 0 : i32
    return %c0_i32, %c0_i32_0 : i32, i32
  }
  func.func @transform_2(%arg0: i32) -> (i32, i32) {
    %c0_i32 = arith.constant 0 : i32
    %c0_i32_0 = arith.constant 0 : i32
    return %arg0, %c0_i32 : i32, i32
  }
  func.func @transform_3(%arg0: i32) -> (i32, i32) {
    %c0_i32 = arith.constant 0 : i32
    %c0_i32_0 = arith.constant 0 : i32
    return %arg0, %c0_i32 : i32, i32
  }
}

</mosaic_0001>

<bundles_post_ra>
// kernel: tpu_custom_call.1
= control target key start
LH: loop header
LB: loop body
LE: loop exit
PB: predicated region body
PF: predicated region fallthrough
CT: control target
= control target key end

     0   :  { %8 = vsyncpa [#allocation3], 0  ;;  %s309_s0 = inlined_call_operand.hbm [shape: f32[2,8,32], index: 0, kind: input, shape index: {}]   ;;  %s310_s1 = inlined_call_operand.vmem [shape: f32[1,32], index: 1, kind: input, shape index: {}]   ;;  %s311_s2 = inlined_call_operand.vmem [shape: f32[2,1], index: 2, kind: input, shape index: {}]   ;;  %s312_s3 = inlined_call_operand.hbm [shape: f32[2,8], index: 3, kind: output, shape index: {}]  }
   0x1   :  { %9 = vsyncpa [#allocation4], 0  ;;  %s240_s12 = smov [#allocation2]   ;;  %s192_s16 = scalar_lea.hbm %s309_s0, 256 }
   0x2   :  { %s15_s13 = sshll.u32 %s240_s12, 4  ;;  %p193_p0 = scmp.ne.s32.totalorder %s309_s0, %s192_s16  ;;  %s16_s13 = int_to_ptr.vmem [resolvable:$true] %s15_s13 }
   0x3   :  { %p196_p1 = scmp.lt.u32.totalorder %s192_s16, %s309_s0 }
   0x5   :  { %p198_p2 = pnand %p196_p1, %p193_p0 }
   0x7   :  { %201 = shalt.err (!%p198_p2)
}
   0x8   :  { %s202_s21 = scalar_lea.vmem %s16_s13, 256  ;;  %p207_p4 = scmp.lt.s32.totalorder %s16_s13, %s16_s13 }
   0x9   :  { %p203_p3 = scmp.ne.s32.totalorder %s16_s13, %s202_s21  ;;  %p208_p5 = scmp.lt.s32.totalorder %s202_s21, %s202_s21 }
   0xb   :  { %p209_p6 = por %p208_p5, %p207_p4 }
   0xd   :  { %p210_p7 = pnand %p209_p6, %p203_p3 }
   0xf   :  { %213 = shalt.err (!%p210_p7)
}
  0x10   :  { %s241_s22 = smov 128   ;;  %s242_s23 = smov 8  }
  0x11   :  { %21 = dma.hbm_to_vmem [thread:$0]  %s309_s0, 256, %s16_s13, [#allocation3], %s241_s22, %s241_s22, %s242_s23  }
  0x12   :  { %236 = dma.done.wait [#allocation3], 256  }
  0x13   :  { %237 = vsyncadd [#allocation3], 4294967040  ;;  %v52_v0 = vlaneseq  ;;  %v243_v1 = vmov 0   ;;  %v29_v5 = vld [vmem:[#allocation2] sm:$0xff]  ;;  %vm40_vm0 = vcmask 261120   ;;  %v30_v7 = vld [vmem:[#allocation2 + $0x8] sm:$0xff] }
  0x14   :  { %182 = vset.pattern.permute.xlu1 %v243_v1  ;;  %183 = vset.pattern.permute.xlu0 %v243_v1  ;;  %v176_v6 = vld [vmem:[%s310_s1] ss:$0 sm:$0xff]  ;;  %vm82_vm1 = vcmask 1041409   ;;  %vm85_vm2 = vcmask 58368   ;;  %s244_s1 = smov [#allocation5]  }
  0x15   :  { %v53_v2 = vshrl.u32 %v52_v0, 7  ;;  %v73_v3 = vand.u32 127, %v52_v0  ;;  %v38_v8 = vmul.f32 %v176_v6, %v29_v5  ;;  %v39_v9 = vmul.f32 %v176_v6, %v30_v7  ;;  %v47_v10 = vld [vmem:[%s311_s2] sm:$0x3]  ;;  %s167_s2 = sshll.u32 %s244_s1, 4  ;;  %s168_s2 = int_to_ptr.vmem [resolvable:$true] %s167_s2 }
  0x16   :  { %50 = vperm.xlu1 %182, %v47_v10   ;;  %s214_s29 = scalar_lea.vmem %s168_s2, 32  ;;  %p219_p9 = scmp.lt.s32.totalorder %s168_s2, %s168_s2 }
  0x17   :  { %v277_v4 = vsub.s32 %v73_v3, %v53_v2  ;;  %v41_v11 = vsel %vm40_vm0, %v38_v8, 0.0  ;;  %v44_v12 = vsel %vm40_vm0, %v39_v9, 0.0  ;;  %v54_v13 = vsub.s32 0, %v53_v2  ;;  %p215_p8 = scmp.ne.s32.totalorder %s168_s2, %s214_s29  ;;  %p220_p10 = scmp.lt.s32.totalorder %s214_s29, %s214_s29 }
  0x18   :  { %42 = vadd.xlane.f32.xlu0 %v41_v11  ;;  %v58_v15 = vsub.s32 1, %v53_v2 }
  0x19   :  { %p221_p11 = por %p220_p10, %p219_p9 }
  0x1b   :  { %p222_p12 = pnand %p221_p11, %p215_p8 }
  0x1c   :  { %45 = vadd.xlane.f32.xlu0 %v44_v12 }
  0x95   :  { %v51_v14 = vpop.permute.xlu1 %50 }
  0x96   :  { %v55_v16 = vrot.slane %v51_v14, %v54_v13  ;;  %v59_v18 = vrot.slane %v51_v14, %v58_v15 }
  0xa5   :  { %v43_v17 = vpop.xlane.xlu0 %42 }
  0xa6   :  { %v62_v19 = vadd.f32 %v55_v16, %v43_v17 }
  0xa8   :  { %67 = vperm.xlu1 %182, %v62_v19  }
  0xa9   :  { %v46_v20 = vpop.xlane.xlu0 %45 }
  0xaa   :  { %v63_v21 = vadd.f32 %v59_v18, %v46_v20 }
  0xac   :  { %70 = vperm.xlu0 %183, %v63_v21  }
 0x127   :  { %v68_v22 = vpop.permute.xlu1 %67 }
 0x128   :  { %v77_v24 = vrot.slane %v68_v22, %v277_v4 }
 0x12b   :  { %v71_v23 = vpop.permute.xlu0 %70 }
 0x12c   :  { %v81_v25 = vrot.slane %v71_v23, %v277_v4 }
 0x12e   :  { %v83_v26 = vsel %vm82_vm1, %v81_v25, %v77_v24 }
 0x12f   :  { %v86_v27 = vsel %vm85_vm2, %v83_v26, -inf }
 0x130   :  { %87 = vmax.xlane.f32.xlu1 %v86_v27 }
 0x1bd   :  { %v88_v28 = vpop.xlane.xlu1 %87 }
 0x1be   :  { %v93_v29 = vrot.slane %v88_v28, %v54_v13  ;;  %v97_v30 = vrot.slane %v88_v28, %v58_v15 }
 0x1c0   :  { %v100_v31 = vsub.f32 %v62_v19, %v93_v29  ;;  %v101_v32 = vsub.f32 %v63_v21, %v97_v30 }
 0x1c2   :  { %v102_v33 = vmul.f32 1.442695, %v100_v31  ;;  %v104_v34 = vmul.f32 1.442695, %v101_v32 }
 0x1c4   :  { %184 = vpow2.f32 %v102_v33 }
 0x1c5   :  { %186 = vpow2.f32 %v104_v34 }
 0x1ce   :  { %v185_v35 = vpop.eup %184 }
 0x1cf   :  { %v187_v36 = vpop.eup %186  ;;  %109 = vperm.xlu1 %182, %v185_v35  }
 0x1d0   :  { %112 = vperm.xlu0 %183, %v187_v36  }
 0x24e   :  { %v110_v37 = vpop.permute.xlu1 %109 }
 0x24f   :  { %v113_v38 = vpop.permute.xlu0 %112  ;;  %v117_v39 = vrot.slane %v110_v37, %v277_v4 }
 0x250   :  { %v121_v40 = vrot.slane %v113_v38, %v277_v4 }
 0x252   :  { %v122_v41 = vsel %vm82_vm1, %v121_v40, %v117_v39 }
 0x253   :  { %v124_v42 = vsel %vm85_vm2, %v122_v41, 0.0 }
 0x254   :  { %125 = vadd.xlane.f32.xlu0 %v124_v42 }
 0x2e1   :  { %v126_v43 = vpop.xlane.xlu0 %125 }
 0x2e2   :  { %v131_v44 = vrot.slane %v126_v43, %v54_v13  ;;  %v135_v45 = vrot.slane %v126_v43, %v58_v15 }
 0x2e4   :  { %188 = vrcp.f32 %v131_v44 }
 0x2e5   :  { %190 = vrcp.f32 %v135_v45 }
 0x2ee   :  { %v189_v46 = vpop.eup %188 }
 0x2ef   :  { %v139_v47 = vmul.f32 %v189_v46, %v185_v35  ;;  %v191_v48 = vpop.eup %190 }
 0x2f0   :  { %v141_v49 = vmul.f32 %v191_v48, %v187_v36 }
 0x2f1   :  { %145 = vperm.xlu1 %182, %v139_v47  }
 0x2f5   :  { %148 = vperm.xlu1 %182, %v141_v49  }
 0x370   :  { %v146_v50 = vpop.permute.xlu1 %145 }
 0x371   :  { %v153_v52 = vrot.slane %v146_v50, %v277_v4 }
 0x374   :  { %v149_v51 = vpop.permute.xlu1 %148 }
 0x375   :  { %v157_v53 = vrot.slane %v149_v51, %v277_v4 }
 0x377   :  { %v158_v54 = vsel %vm82_vm1, %v157_v53, %v153_v52 }
 0x378   :  { %160 = vst.msk [vmem:[#allocation5] sm:$0x3] %vm85_vm2, %v158_v54 }
 0x379   :  { %225 = shalt.err (!%p222_p12)
}
 0x37a   :  { %s226_s5 = scalar_lea.hbm %s312_s3, 32 }
 0x37b   :  { %p227_p13 = scmp.ne.s32.totalorder %s312_s3, %s226_s5  ;;  %p230_p0 = scmp.lt.u32.totalorder %s226_s5, %s312_s3 }
 0x37d   :  { %p232_p1 = pnand %p230_p0, %p227_p13 }
 0x37f   :  { %235 = shalt.err (!%p232_p1)
}
 0x380   :  { %170 = dma.vmem_to_hbm [thread:$0]  %s168_s2, 32, %s312_s3, [#allocation4]  }
 0x381   :  { %238 = dma.done.wait [#allocation4], 32  }
 0x382   :  { %239 = vsyncadd [#allocation4], 4294967264 }
 0x383   :  { %174 = vsyncpa [#allocation3], 1 }
 0x384   :  { %175 = vsyncpa [#allocation4], 1 }

</bundles_post_ra>
